<compile_context>
chip_gen: v7x
topology: tpu7x:2x2x1
jax: 0.10.0
libtpu: 0.0.40
codegen_flags: <defaults>
</compile_context>

<pallas_src>
import jax
import jax.numpy as jnp
from jax import lax
from jax.experimental import pallas as pl
from jax.experimental.pallas import tpu as pltpu


def mlp_kernel(x_ref, w1_ref, b1_ref, w2t_ref, b2_ref, o_ref):
    # Layer 1 on the MXU: (tile_b, K) @ (K, H) -> (tile_b, H), f32 accumulation.
    h = jnp.dot(x_ref[...], w1_ref[...], preferred_element_type=jnp.float32)
    # Bias + ReLU on the VPU in f32.
    h = jnp.maximum(h + b1_ref[...], 0.0)
    # Layer 2 (output width 1) as an "A @ B^T" MXU contraction that yields the
    # lane-dense (1, tile_b) row directly (no XLU reduce / sublane->lane relayout):
    #   (1, H) contracted with (tile_b, H) over H -> (1, tile_b).
    out = lax.dot_general(
        w2t_ref[...], h,
        dimension_numbers=(((1,), (1,)), ((), ())),
        preferred_element_type=jnp.float32,
    )
    # Scalar bias from SMEM; unmasked lane-dense store.
    o_ref[...] = out + b2_ref[0]


def _round_up(n, m):
    return ((n + m - 1) // m) * m


def _default_dim_semantics():
    # v7x has two TensorCores; plain "parallel" is documented as a near-no-op there,
    # CORE_PARALLEL actually shards the batch grid across both TCs.  v5e/v6e (single
    # TC) and older jax versions keep the plain "parallel" path.
    try:
        kind = jax.devices()[0].device_kind.lower()
        if "v7" in kind and hasattr(pltpu, "CORE_PARALLEL"):
            return (pltpu.CORE_PARALLEL,)
    except Exception:
        pass
    return ("parallel",)


def mlp_forward(x, w1, b1, w2, b2, *, tile_b=2048, matmul_dtype=None,
                x_buffer_count=2, dimension_semantics=None):
    """Fused MLP forward: relu(x @ w1 + b1) @ w2 + b2 -> (B, 1) float32."""
    B, K = x.shape
    H = w1.shape[1]

    # Batch tile: multiple of 128 (lane-dense output row), clamped for tiny batches.
    # Default 2048 amortizes per-step overhead; sweep 2048-8192 for large B.
    tile_b = _round_up(max(128, int(tile_b)), 128)
    tile_b = min(tile_b, _round_up(B, 128))
    n_tiles = pl.cdiv(B, tile_b)
    b_pad = n_tiles * tile_b

    if matmul_dtype is not None:
        # bf16 MXU operands are native on v5e/v6e/v7x; epilogue stays f32.
        # w1 is tiny and VMEM-resident, so casting it here is free.  x is the
        # dominant HBM stream: callers should pass x already in matmul_dtype (or
        # fuse the cast into x's producer); the defensive cast below costs an
        # extra HBM pass and should not be relied on.
        w1 = w1.astype(matmul_dtype)
        if x.dtype != matmul_dtype:
            x = x.astype(matmul_dtype)

    b1_row = jnp.asarray(b1, jnp.float32).reshape(1, H)
    w2_row = jnp.asarray(w2, jnp.float32).reshape(1, H)   # (H, 1) -> (1, H) row
    b2_s = jnp.asarray(b2, jnp.float32).reshape(1)        # scalar, lives in SMEM

    # x is NOT padded: the last batch tile may read past the end of x (unspecified
    # values).  Those rows only feed output lanes >= B, which are sliced off below,
    # and the epilogue has no NaN-sensitive ops (no divides).
    x_spec_kwargs = {}
    if x_buffer_count and int(x_buffer_count) > 2:
        # Optional deeper pipelining of the x stream (use only if the profile shows
        # exposed DMA between steps after enlarging tile_b).
        x_spec_kwargs["pipeline_mode"] = pl.Buffered(int(x_buffer_count))
    x_spec = pl.BlockSpec((tile_b, K), lambda i: (i, 0), **x_spec_kwargs)

    # Explicit VMEM budget: the (tile_b, K) x block lane-pads K -> 128; h is
    # (tile_b, 128) f32.  v5e's default scoped VMEM is 16 MiB, v7x physical is 64 MiB.
    itemsize_x = jnp.dtype(x.dtype).itemsize
    lane = 128
    vmem_est = (
        max(2, int(x_buffer_count)) * tile_b * lane * itemsize_x   # x buffers (lane-padded)
        + tile_b * H * 4                                           # h (f32)
        + 2 * tile_b * 4                                           # output row (double buffered)
        + 2 * (K * H * itemsize_x + 2 * H * 4)                     # weights / biases
    )
    vmem_limit = int(min(64 << 20, max(32 << 20, 2 * vmem_est)))

    if dimension_semantics is None:
        dimension_semantics = _default_dim_semantics()

    cost = pl.CostEstimate(
        flops=2 * B * K * H + 2 * B * H,
        transcendentals=0,
        bytes_accessed=(B * K * itemsize_x                 # x stream (dominant)
                        + K * H * itemsize_x + 2 * H * 4 + 4
                        + b_pad * 4),                      # output row
    )

    out_row = pl.pallas_call(
        mlp_kernel,
        out_shape=jax.ShapeDtypeStruct((1, b_pad), jnp.float32),
        grid=(n_tiles,),
        in_specs=[
            x_spec,                                              # x: streamed per batch tile
            pl.BlockSpec((K, H), lambda i: (0, 0)),              # w1: VMEM-resident
            pl.BlockSpec((1, H), lambda i: (0, 0)),              # b1: VMEM-resident
            pl.BlockSpec((1, H), lambda i: (0, 0)),              # w2 (transposed row)
            pl.BlockSpec(memory_space=pltpu.MemorySpace.SMEM),   # b2: scalar in SMEM
        ],
        out_specs=pl.BlockSpec((1, tile_b), lambda i: (0, i)),   # lane-dense output row
        compiler_params=pltpu.CompilerParams(
            dimension_semantics=dimension_semantics,
            vmem_limit_bytes=vmem_limit,
        ),
        cost_estimate=cost,
    )(x, w1, b1_row, w2_row, b2_s)

    # Layout plumbing only: lane-dense (1, b_pad) row -> (B, 1) column.
    # Lanes >= B contain relu(garbage@w1 + b1)@w2 + b2 from the partial last x block
    # and MUST be sliced off here (never reduce over the raw row).
    return out_row.reshape(-1)[:B].reshape(B, 1)


if __name__ == "__main__":
    key = jax.random.PRNGKey(0)
    batch = 8
    input_size = 32
    hidden = 128

    k_x, k_w1, k_b1, k_w2, k_b2 = jax.random.split(key, 5)

    # Deterministic init (uniform, matching nn.Linear's fan-in scaling).
    x = jax.random.normal(k_x, (batch, input_size), dtype=jnp.float32)
    bound1 = 1.0 / (input_size ** 0.5)
    w1 = jax.random.uniform(k_w1, (input_size, hidden), jnp.float32, -bound1, bound1)
    b1 = jax.random.uniform(k_b1, (hidden,), jnp.float32, -bound1, bound1)
    bound2 = 1.0 / (hidden ** 0.5)
    w2 = jax.random.uniform(k_w2, (hidden, 1), jnp.float32, -bound2, bound2)
    b2 = jax.random.uniform(k_b2, (1,), jnp.float32, -bound2, bound2)

    # Reference in plain JAX (same math as the PyTorch module).
    ref = jnp.maximum(x @ w1 + b1, 0.0) @ w2 + b2

    # f32 path (exact; default for training-accuracy use).
    out = mlp_forward(x, w1, b1, w2, b2)
    jax.block_until_ready(out)
    assert out.shape == (batch, 1)
    assert jnp.allclose(out, ref, atol=1e-5, rtol=1e-5)

    # bf16 MXU-operand path: caller supplies bf16 x so the wrapper adds no HBM cast pass.
    x_bf16 = x.astype(jnp.bfloat16)
    out_bf16 = mlp_forward(x_bf16, w1, b1, w2, b2, matmul_dtype=jnp.bfloat16)
    jax.block_until_ready(out_bf16)
    assert out_bf16.shape == (batch, 1)
    assert jnp.allclose(out_bf16, ref, atol=1e-1, rtol=1e-1)

    print("KERNEL_OK")
</pallas_src>

<mosaic_0001>
module attributes {stable_mosaic.version = 11 : i64} {
  func.func @mlp_kernel(%arg0: i32, %arg1: memref<128x32xf32, #tpu.memory_space<vmem>>, %arg2: memref<32x128xf32, #tpu.memory_space<vmem>>, %arg3: memref<1x128xf32, #tpu.memory_space<vmem>>, %arg4: memref<1x128xf32, #tpu.memory_space<vmem>>, %arg5: memref<1xf32, #tpu.memory_space<smem>>, %arg6: memref<1x128xf32, #tpu.memory_space<vmem>>) attributes {dimension_semantics = [#tpu.dimension_semantics<parallel>], iteration_bounds = array<i64: 1>, scalar_prefetch = 0 : i64, scratch_operands = 0 : i64, tpu.core_type = #tpu.core_type<tc>, window_params = [{transform_indices = @transform_0, window_bounds = array<i64: 128, 32>}, {pipeline_mode = #tpu.pipeline_mode<synchronous>, transform_indices = @transform_1, window_bounds = array<i64: 32, 128>}, {pipeline_mode = #tpu.pipeline_mode<synchronous>, transform_indices = @transform_2, window_bounds = array<i64: 1, 128>}, {pipeline_mode = #tpu.pipeline_mode<synchronous>, transform_indices = @transform_3, window_bounds = array<i64: 1, 128>}, {transform_indices = @transform_4, window_bounds = array<i64: 1>}, {transform_indices = @transform_5, window_bounds = array<i64: 1, 128>}]} {
    %c0 = arith.constant 0 : index
    %c0_0 = arith.constant 0 : index
    %0 = vector.load %arg1[%c0, %c0_0] : memref<128x32xf32, #tpu.memory_space<vmem>>, vector<128x32xf32>
    %c0_1 = arith.constant 0 : index
    %c0_2 = arith.constant 0 : index
    %1 = vector.load %arg2[%c0_1, %c0_2] : memref<32x128xf32, #tpu.memory_space<vmem>>, vector<32x128xf32>
    %cst = arith.constant dense<0.000000e+00> : vector<128x128xf32>
    %2 = tpu.matmul %0, %1, %cst {dimension_numbers = #tpu.dot_dimension_numbers<[1], [0], [0], [1], [0, 0, 1, 1], [], []>} : vector<128x32xf32>, vector<32x128xf32>, vector<128x128xf32> -> vector<128x128xf32>
    %c0_3 = arith.constant 0 : index
    %c0_4 = arith.constant 0 : index
    %3 = vector.load %arg3[%c0_3, %c0_4] : memref<1x128xf32, #tpu.memory_space<vmem>>, vector<1x128xf32>
    %4 = vector.broadcast %3 : vector<1x128xf32> to vector<128x128xf32>
    %5 = arith.addf %2, %4 : vector<128x128xf32>
    %cst_5 = arith.constant 0.000000e+00 : f32
    %6 = vector.broadcast %cst_5 : f32 to vector<128x128xf32>
    %7 = arith.maximumf %5, %6 : vector<128x128xf32>
    %c0_6 = arith.constant 0 : index
    %c0_7 = arith.constant 0 : index
    %8 = vector.load %arg4[%c0_6, %c0_7] : memref<1x128xf32, #tpu.memory_space<vmem>>, vector<1x128xf32>
    %cst_8 = arith.constant dense<0.000000e+00> : vector<1x128xf32>
    %9 = tpu.matmul %8, %7, %cst_8 {dimension_numbers = #tpu.dot_dimension_numbers<[1], [1], [0], [0], [0, 0, 1, 0], [], []>} : vector<1x128xf32>, vector<128x128xf32>, vector<1x128xf32> -> vector<1x128xf32>
    %c0_9 = arith.constant 0 : index
    %10 = memref.load %arg5[%c0_9] : memref<1xf32, #tpu.memory_space<smem>>
    %11 = vector.broadcast %10 : f32 to vector<1x128xf32>
    %12 = arith.addf %9, %11 : vector<1x128xf32>
    %c0_10 = arith.constant 0 : index
    %c0_11 = arith.constant 0 : index
    %13 = vector.load %arg6[%c0_10, %c0_11] : memref<1x128xf32, #tpu.memory_space<vmem>>, vector<1x128xf32>
    tpu.vector_store %arg6[%c0_10, %c0_11], %12 {strides = array<i32>} : memref<1x128xf32, #tpu.memory_space<vmem>>, vector<1x128xf32>,
    return
  }
  func.func @transform_0(%arg0: i32) -> (i32, i32) {
    %c0_i32 = arith.constant 0 : i32
    %c0_i32_0 = arith.constant 0 : i32
    return %arg0, %c0_i32 : i32, i32
  }
  func.func @transform_1(%arg0: i32) -> (i32, i32) {
    %c0_i32 = arith.constant 0 : i32
    %c0_i32_0 = arith.constant 0 : i32
    %c0_i32_1 = arith.constant 0 : i32
    return %c0_i32, %c0_i32_0 : i32, i32
  }
  func.func @transform_2(%arg0: i32) -> (i32, i32) {
    %c0_i32 = arith.constant 0 : i32
    %c0_i32_0 = arith.constant 0 : i32
    %c0_i32_1 = arith.constant 0 : i32
    return %c0_i32, %c0_i32_0 : i32, i32
  }
  func.func @transform_3(%arg0: i32) -> (i32, i32) {
    %c0_i32 = arith.constant 0 : i32
    %c0_i32_0 = arith.constant 0 : i32
    %c0_i32_1 = arith.constant 0 : i32
    return %c0_i32, %c0_i32_0 : i32, i32
  }
  func.func @transform_4(%arg0: i32) -> i32 {
    %c0_i32 = arith.constant 0 : i32
    %c0_i32_0 = arith.constant 0 : i32
    return %c0_i32 : i32
  }
  func.func @transform_5(%arg0: i32) -> (i32, i32) {
    %c0_i32 = arith.constant 0 : i32
    %c0_i32_0 = arith.constant 0 : i32
    return %c0_i32, %arg0 : i32, i32
  }
}

</mosaic_0001>

<bundles_post_ra>
// kernel: tpu_custom_call.1
= control target key start
LH: loop header
LB: loop body
LE: loop exit
PB: predicated region body
PF: predicated region fallthrough
CT: control target
= control target key end

     0   :  { %11 = vsyncpa [#allocation4], 0  ;;  %s717_s0 = inlined_call_operand.hbm [shape: f32[8,32], index: 0, kind: input, shape index: {}]   ;;  %s718_s1 = inlined_call_operand.hbm [shape: f32[32,128], index: 1, kind: input, shape index: {}]   ;;  %s719_s2 = inlined_call_operand.vmem [shape: f32[1,128], index: 2, kind: input, shape index: {}]   ;;  %s720_s3 = inlined_call_operand.vmem [shape: f32[1,128], index: 3, kind: input, shape index: {}]   ;;  %s721_s4 = inlined_call_operand.<no memory space> [shape: f32[1], index: 4, kind: input, shape index: {}]   ;;  %s722_s5 = inlined_call_operand.hbm [shape: f32[1,128], index: 5, kind: output, shape index: {}]  }
   0x1   :  { %12 = vsyncpa [#allocation7], 0 }
   0x2   :  { %13 = vsyncpa [#allocation5], 0 }
   0x3   :  { %18 = vsyncadd [#allocation4], 1920  ;;  %s610_s18 = smov [#allocation3]   ;;  %s538_s22 = scalar_lea.hbm %s717_s0, 128 }
   0x4   :  { %s19_s19 = sshll.u32 %s610_s18, 4  ;;  %p539_p0 = scmp.ne.s32.totalorder %s717_s0, %s538_s22  ;;  %s20_s19 = int_to_ptr.vmem [resolvable:$true] %s19_s19 }
   0x5   :  { %p542_p1 = scmp.lt.u32.totalorder %s538_s22, %s717_s0 }
   0x7   :  { %p544_p2 = pnand %p542_p1, %p539_p0 }
   0x9   :  { %547 = shalt.err (!%p544_p2)
}
   0xa   :  { %s548_s27 = scalar_lea.vmem %s20_s19, 128  ;;  %s552_s28 = scalar_lea.vmem %s20_s19, 2048 }
   0xb   :  { %p549_p3 = scmp.ne.s32.totalorder %s20_s19, %s548_s27  ;;  %p553_p4 = scmp.lt.s32.totalorder %s20_s19, %s20_s19 }
   0xc   :  { %p554_p5 = scmp.lt.s32.totalorder %s552_s28, %s548_s27 }
   0xe   :  { %p555_p6 = por %p554_p5, %p553_p4 }
  0x10   :  { %p556_p7 = pnand %p555_p6, %p549_p3 }
  0x12   :  { %559 = shalt.err (!%p556_p7)
}
  0x13   :  { %s611_s29 = smov 128   ;;  %s612_s30 = smov 8  }
  0x14   :  { %25 = dma.hbm_to_vmem [thread:$0]  %s717_s0, 128, %s20_s19, [#allocation4], %s611_s29, %s611_s29, %s612_s30  }
  0x15   :  { %s613_s8 = smov [#allocation6]   ;;  %s560_s12 = scalar_lea.hbm %s718_s1, 512 }
  0x16   :  { %s31_s9 = sshll.u32 %s613_s8, 4  ;;  %p561_p8 = scmp.ne.s32.totalorder %s718_s1, %s560_s12  ;;  %s32_s9 = int_to_ptr.vmem [resolvable:$true] %s31_s9 }
  0x17   :  { %p564_p9 = scmp.lt.u32.totalorder %s560_s12, %s718_s1 }
  0x19   :  { %p566_p10 = pnand %p564_p9, %p561_p8 }
  0x1b   :  { %569 = shalt.err (!%p566_p10)
}
  0x1c   :  { %s570_s17 = scalar_lea.vmem %s32_s9, 512  ;;  %p575_p12 = scmp.lt.s32.totalorder %s32_s9, %s32_s9 }
  0x1d   :  { %p571_p11 = scmp.ne.s32.totalorder %s32_s9, %s570_s17  ;;  %p576_p13 = scmp.lt.s32.totalorder %s570_s17, %s570_s17 }
  0x1f   :  { %p577_p0 = por %p576_p13, %p575_p12 }
  0x21   :  { %p578_p1 = pnand %p577_p0, %p571_p11 }
  0x23   :  { %581 = shalt.err (!%p578_p1)
}
  0x24   :  { %37 = dma.hbm_to_vmem [thread:$0]  %s718_s1, 512, %s32_s9, [#allocation7], %s611_s29, %s611_s29, %s612_s30  }
  0x25   :  { %604 = dma.done.wait [#allocation4], 2048  }
  0x26   :  { %605 = vsyncadd [#allocation4], 4294965248 }
  0x27   :  { %606 = dma.done.wait [#allocation7], 512  }
  0x28   :  { %607 = vsyncadd [#allocation7], 4294966784  ;;  %vm77_vm0 = vcmask 261120   ;;  %v66_v0 = vld [vmem:[#allocation6] sm:$0xff]  ;;  %v67_v1 = vld [vmem:[#allocation6 + $0x8] sm:$0xff]  ;;  %v614_v22 = vmov 0.0|0.0  }
  0x29   :  { %v68_v2 = vld [vmem:[#allocation6 + $0x10] sm:$0xff]  ;;  %v498_v3 = vpack.c.bf16 %v67_v1, %v66_v0  ;;  %v69_v4 = vld [vmem:[#allocation6 + $0x18] sm:$0xff]  ;;  %v50_v5 = vld [vmem:[#allocation3] sm:$0xff]  ;;  %506 = vmatprep.subr.bf16.mxu1 %v614_v22  ;;  %vm615_vm1 = vmmov 0   ;;  %v616_v23 = vmov 0.0   ;;  %s617_s23 = smov [#allocation8]  }
  0x2a   :  { %v502_v6 = vpack.c.bf16 %v69_v4, %v68_v2  ;;  %439 = vmatprep.mubr.msk.f32.mxu0 %vm77_vm0, %v50_v5  ;;  %v51_v7 = vld [vmem:[#allocation3 + $0x8] sm:$0xff]  ;;  %v52_v8 = vld [vmem:[#allocation3 + $0x10] sm:$0xff]  ;;  %v53_v9 = vld [vmem:[#allocation3 + $0x18] sm:$0xff]  ;;  %495 = vmatprep.mubr.msk.f32.mxu1 %vm615_vm1, %v616_v23  ;;  %s367_s24 = sshll.u32 %s617_s23, 4  ;;  %s368_s24 = int_to_ptr.vmem [resolvable:$true] %s367_s24 }
  0x2b   :  { %499 = vmatprep.subr.bf16.mxu0 %v498_v3  ;;  %v54_v10 = vld [vmem:[#allocation3 + $0x20] sm:$0xff]  ;;  %v55_v11 = vld [vmem:[#allocation3 + $0x28] sm:$0xff]  ;;  %v56_v12 = vld [vmem:[#allocation3 + $0x30] sm:$0xff]  ;;  %s582_s25 = scalar_lea.vmem %s368_s24, 16  ;;  %s586_s26 = scalar_lea.vmem %s368_s24, 32 }
  0x2c   :  { %501 = vmatpush3.bf16.msra.mxu0 %v498_v3  ;;  %v57_v13 = vld [vmem:[#allocation3 + $0x38] sm:$0xff]  ;;  %v58_v14 = vld [vmem:[#allocation3 + $0x40] sm:$0xff]  ;;  %v59_v15 = vld [vmem:[#allocation3 + $0x48] sm:$0xff]  ;;  %p583_p2 = scmp.ne.s32.totalorder %s368_s24, %s582_s25  ;;  %p587_p3 = scmp.lt.s32.totalorder %s368_s24, %s368_s24 }
  0x2d   :  { %503 = vmatprep.subr.bf16.mxu0 %v502_v6  ;;  %v60_v16 = vld [vmem:[#allocation3 + $0x50] sm:$0xff]  ;;  %v61_v17 = vld [vmem:[#allocation3 + $0x58] sm:$0xff]  ;;  %v62_v18 = vld [vmem:[#allocation3 + $0x60] sm:$0xff]  ;;  %p588_p4 = scmp.lt.s32.totalorder %s586_s26, %s582_s25 }
  0x2e   :  { %v63_v19 = vld [vmem:[#allocation3 + $0x68] sm:$0xff]  ;;  %v64_v20 = vld [vmem:[#allocation3 + $0x70] sm:$0xff]  ;;  %v65_v21 = vld [vmem:[#allocation3 + $0x78] sm:$0xff] }
  0x2f   :  { %v377_v24 = vld [vmem:[%s719_s2] ss:$0 sm:$0xff]  ;;  %p589_p5 = por %p588_p4, %p587_p3 }
  0x30   :  { %505 = vmatpush3.bf16.msra.mxu0 %v502_v6 }
  0x31   :  { %p590_p6 = pnand %p589_p5, %p583_p2 }
  0x33   :  { %440 = vmatmul.mubr.msk.f32.vlgmr.msra.gmra.mrb[0].mxu0 %vm77_vm0, %v51_v7 }
  0x34   :  { %442 = vmatprep.mubr.msk.f32.mxu0 %vm77_vm0, %v52_v8 }
  0x37   :  { %443 = vmatmul.mubr.msk.f32.gmra.mrb[2].mxu0 %vm77_vm0, %v53_v9 }
  0x38   :  { %445 = vmatprep.mubr.msk.f32.mxu0 %vm77_vm0, %v54_v10 }
  0x3b   :  { %446 = vmatmul.mubr.msk.f32.gmra.mrb[4].mxu0 %vm77_vm0, %v55_v11 }
  0x3c   :  { %448 = vmatprep.mubr.msk.f32.mxu0 %vm77_vm0, %v56_v12 }
  0x3f   :  { %449 = vmatmul.mubr.msk.f32.gmra.mrb[6].mxu0 %vm77_vm0, %v57_v13 }
  0x40   :  { %451 = vmatprep.mubr.msk.f32.mxu0 %vm77_vm0, %v58_v14 }
  0x43   :  { %452 = vmatmul.mubr.msk.f32.gmra.mrb[8].mxu0 %vm77_vm0, %v59_v15 }
  0x44   :  { %454 = vmatprep.mubr.msk.f32.mxu0 %vm77_vm0, %v60_v16 }
  0x47   :  { %455 = vmatmul.mubr.msk.f32.gmra.mrb[10].mxu0 %vm77_vm0, %v61_v17  ;;  %v287_v17 = vld [vmem:[%s720_s3] sm:$0x1] }
  0x48   :  { %457 = vmatprep.mubr.msk.f32.mxu0 %vm77_vm0, %v62_v18  ;;  %v289_v18 = vstv %s721_s4 }
  0x4b   :  { %458 = vmatmul.mubr.msk.f32.gmra.mrb[12].mxu0 %vm77_vm0, %v63_v19 }
  0x4c   :  { %460 = vmatprep.mubr.msk.f32.mxu0 %vm77_vm0, %v64_v20 }
  0x4f   :  { %461 = vmatmul.mubr.msk.f32.gmra.mrb[14].mxu0 %vm77_vm0, %v65_v21 }
 0x106   :  { %v441_v25 = vpop.f32.mrb[0].mxu0 }
 0x107   :  { %v198_v26 = vadd.f32 %v441_v25, %v377_v24  ;;  %v192_v27 = vpop.f32.mrb[1].mxu0 }
 0x108   :  { %v193_v28 = vadd.f32 %v377_v24, %v192_v27 }
 0x109   :  { %v272_v29 = vmax.f32 %v198_v26, 0.0 }
 0x10a   :  { %v271_v30 = vmax.f32 %v193_v28, 0.0  ;;  %v444_v31 = vpop.f32.mrb[2].mxu0 }
 0x10b   :  { %v208_v32 = vadd.f32 %v444_v31, %v377_v24  ;;  %v202_v33 = vpop.f32.mrb[3].mxu0 }
 0x10c   :  { %v203_v34 = vadd.f32 %v377_v24, %v202_v33  ;;  %v507_v35 = vpack.c.bf16 %v272_v29, %v271_v30 }
 0x10d   :  { %v274_v36 = vmax.f32 %v208_v32, 0.0 }
 0x10e   :  { %v273_v37 = vmax.f32 %v203_v34, 0.0  ;;  %508 = vmatpush3.bf16.xpose.msra.mxu1 %v507_v35  ;;  %v447_v38 = vpop.f32.mrb[4].mxu0 }
 0x10f   :  { %v218_v39 = vadd.f32 %v447_v38, %v377_v24  ;;  %509 = vmatprep.subr.bf16.mxu1 %v614_v22  ;;  %v212_v40 = vpop.f32.mrb[5].mxu0 }
 0x110   :  { %v510_v41 = vpack.c.bf16 %v274_v36, %v273_v37  ;;  %v213_v42 = vadd.f32 %v377_v24, %v212_v40 }
 0x111   :  { %v276_v43 = vmax.f32 %v218_v39, 0.0 }
 0x112   :  { %v275_v44 = vmax.f32 %v213_v42, 0.0  ;;  %v450_v45 = vpop.f32.mrb[6].mxu0 }
 0x113   :  { %v228_v46 = vadd.f32 %v450_v45, %v377_v24  ;;  %v222_v47 = vpop.f32.mrb[7].mxu0 }
 0x114   :  { %v513_v48 = vpack.c.bf16 %v276_v43, %v275_v44  ;;  %v223_v49 = vadd.f32 %v377_v24, %v222_v47 }
 0x115   :  { %v278_v50 = vmax.f32 %v228_v46, 0.0 }
 0x116   :  { %511 = vmatpush3.bf16.xpose.msra.mxu1 %v510_v41  ;;  %v277_v51 = vmax.f32 %v223_v49, 0.0  ;;  %v453_v52 = vpop.f32.mrb[8].mxu0 }
 0x117   :  { %512 = vmatprep.subr.bf16.mxu1 %v614_v22  ;;  %v238_v53 = vadd.f32 %v453_v52, %v377_v24  ;;  %v232_v54 = vpop.f32.mrb[9].mxu0 }
 0x118   :  { %v516_v55 = vpack.c.bf16 %v278_v50, %v277_v51  ;;  %v233_v56 = vadd.f32 %v377_v24, %v232_v54 }
 0x119   :  { %v280_v57 = vmax.f32 %v238_v53, 0.0 }
 0x11a   :  { %v279_v58 = vmax.f32 %v233_v56, 0.0  ;;  %v456_v59 = vpop.f32.mrb[10].mxu0 }
 0x11b   :  { %v248_v60 = vadd.f32 %v456_v59, %v377_v24  ;;  %v242_v61 = vpop.f32.mrb[11].mxu0 }
 0x11c   :  { %v519_v62 = vpack.c.bf16 %v280_v57, %v279_v58  ;;  %v243_v63 = vadd.f32 %v377_v24, %v242_v61 }
 0x11d   :  { %v282_v0 = vmax.f32 %v248_v60, 0.0 }
 0x11e   :  { %514 = vmatpush3.bf16.xpose.msra.mxu1 %v513_v48  ;;  %v281_v1 = vmax.f32 %v243_v63, 0.0  ;;  %v459_v2 = vpop.f32.mrb[12].mxu0 }
 0x11f   :  { %515 = vmatprep.subr.bf16.mxu1 %v614_v22  ;;  %v258_v3 = vadd.f32 %v459_v2, %v377_v24  ;;  %v252_v4 = vpop.f32.mrb[13].mxu0 }
 0x120   :  { %v522_v5 = vpack.c.bf16 %v282_v0, %v281_v1  ;;  %v253_v6 = vadd.f32 %v377_v24, %v252_v4 }
 0x121   :  { %v284_v7 = vmax.f32 %v258_v3, 0.0 }
 0x122   :  { %v283_v8 = vmax.f32 %v253_v6, 0.0  ;;  %v462_v9 = vpop.f32.mrb[14].mxu0 }
 0x123   :  { %v268_v10 = vadd.f32 %v462_v9, %v377_v24  ;;  %v262_v11 = vpop.f32.mrb[15].mxu0 }
 0x124   :  { %v525_v12 = vpack.c.bf16 %v284_v7, %v283_v8  ;;  %v263_v13 = vadd.f32 %v377_v24, %v262_v11 }
 0x125   :  { %v286_v14 = vmax.f32 %v268_v10, 0.0 }
 0x126   :  { %517 = vmatpush3.bf16.xpose.msra.mxu1 %v516_v55  ;;  %v285_v15 = vmax.f32 %v263_v13, 0.0 }
 0x127   :  { %518 = vmatprep.subr.bf16.mxu1 %v614_v22 }
 0x128   :  { %v528_v16 = vpack.c.bf16 %v286_v14, %v285_v15 }
 0x12e   :  { %520 = vmatpush3.bf16.xpose.msra.mxu1 %v519_v62 }
 0x12f   :  { %521 = vmatprep.subr.bf16.mxu1 %v614_v22 }
 0x136   :  { %523 = vmatpush3.bf16.xpose.msra.mxu1 %v522_v5 }
 0x137   :  { %524 = vmatprep.subr.bf16.mxu1 %v614_v22 }
 0x13e   :  { %526 = vmatpush3.bf16.xpose.msra.mxu1 %v525_v12 }
 0x13f   :  { %527 = vmatprep.subr.bf16.mxu1 %v614_v22 }
 0x146   :  { %529 = vmatpush3.bf16.xpose.msra.mxu1 %v528_v16 }
 0x14d   :  { %496 = vmatmul.mubr.f32.vlgmr.msra.gmra.mrb[0].mxu1 %v287_v17 }
 0x220   :  { %v356_v19 = vpop.f32.mrb[0].mxu1 }
 0x221   :  { %v357_v20 = vadd.f32 %v356_v19, %v289_v18  ;;  %v497_v21 = vpop.f32.mrb[1].mxu1 }
 0x223   :  { %360 = vst [vmem:[#allocation8] sm:$0x1] %v357_v20 }
 0x224   :  { %593 = shalt.err (!%p590_p6)
}
 0x225   :  { %s594_s28 = scalar_lea.hbm %s722_s5, 16 }
 0x226   :  { %p595_p7 = scmp.ne.s32.totalorder %s722_s5, %s594_s28  ;;  %p598_p8 = scmp.lt.u32.totalorder %s594_s28, %s722_s5 }
 0x228   :  { %p600_p9 = pnand %p598_p8, %p595_p7 }
 0x22a   :  { %603 = shalt.err (!%p600_p9)
}
 0x22b   :  { %370 = dma.vmem_to_hbm [thread:$0]  %s368_s24, 16, %s722_s5, [#allocation5]  }
 0x22c   :  { %608 = dma.done.wait [#allocation5], 16  }
 0x22d   :  { %609 = vsyncadd [#allocation5], 4294967280 }
 0x22e   :  { %374 = vsyncpa [#allocation4], 1 }
 0x22f   :  { %375 = vsyncpa [#allocation7], 1 }
 0x230   :  { %376 = vsyncpa [#allocation5], 1 }

</bundles_post_ra>
